<compile_context>
chip_gen: v5e
topology: v5e:2x2
jax: 0.10.0
libtpu: 0.0.40
codegen_flags: <defaults>
</compile_context>

<pallas_src>
import functools

import numpy as np
import jax
import jax.numpy as jnp
from jax.experimental import pallas as pl
from jax.experimental.pallas import tpu as pltpu


_TINY_BYTES = 512                      # below this: return x (pure-Python fast path)
_MIN_BYTES_FOR_CHUNK_SPLIT = 4 << 20   # only split copies above 4 MiB
_MAX_CHUNKS = 8


# ---------------------------------------------------------------------------
# Primary: aliased, zero-copy kernel (no DMA, no VMEM, no compute).
# ---------------------------------------------------------------------------
def _identity_alias_kernel(x_hbm_ref, o_hbm_ref):
    # The output buffer is aliased to the input buffer, so the data is already
    # in place.  touch() adds a fake read/write dependency on the aliased
    # output so it is considered materialized; zero bytes move.
    del x_hbm_ref
    pltpu.touch(o_hbm_ref)


def _identity_aliased(x):
    return pl.pallas_call(
        _identity_alias_kernel,
        out_shape=jax.ShapeDtypeStruct(x.shape, x.dtype),
        in_specs=[pl.BlockSpec(memory_space=pl.ANY)],
        out_specs=pl.BlockSpec(memory_space=pl.ANY),
        input_output_aliases={0: 0},
        compiler_params=pltpu.CompilerParams(has_side_effects=True),
        cost_estimate=pl.CostEstimate(flops=0, transcendentals=0, bytes_accessed=0),
    )(x)


# ---------------------------------------------------------------------------
# Fallback: explicit HBM->HBM copy with up to 8 concurrent chunk DMAs.
# (Never stages through VMEM; chunk count is a static Python decision.)
# ---------------------------------------------------------------------------
def _identity_copy_kernel(num_chunks, x_hbm_ref, o_hbm_ref, copy_sems):
    copies = [
        pltpu.make_async_copy(x_hbm_ref.at[c], o_hbm_ref.at[c], copy_sems.at[c])
        for c in range(num_chunks)
    ]
    for cp in copies:      # put every descriptor in flight first ...
        cp.start()
    for cp in copies:      # ... then wait on all of them.
        cp.wait()


def _choose_num_chunks(n_elems, itemsize):
    nbytes = n_elems * itemsize
    if nbytes < _MIN_BYTES_FOR_CHUNK_SPLIT:
        return 1
    for k in (_MAX_CHUNKS, 4, 2):      # largest chunk count dividing evenly
        if n_elems % k == 0:
            return k
    return 1


def _identity_copied(x):
    n = x.size
    k = _choose_num_chunks(n, x.dtype.itemsize)
    x2 = x.reshape(k, n // k)          # contiguous chunks along the leading dim
    out = pl.pallas_call(
        functools.partial(_identity_copy_kernel, k),
        out_shape=jax.ShapeDtypeStruct(x2.shape, x2.dtype),
        in_specs=[pl.BlockSpec(memory_space=pl.ANY)],
        out_specs=pl.BlockSpec(memory_space=pl.ANY),
        scratch_shapes=[pltpu.SemaphoreType.DMA((k,))],
        cost_estimate=pl.CostEstimate(
            flops=0,
            transcendentals=0,
            bytes_accessed=2 * n * x.dtype.itemsize,   # 1 read + 1 write per byte
        ),
    )(x2)
    return out.reshape(x.shape)


# ---------------------------------------------------------------------------
# Dispatch.
# ---------------------------------------------------------------------------
_ALIAS_OK = None


def _zero_copy_supported():
    """Probe once whether the aliased no-op kernel lowers on this jax/libtpu."""
    global _ALIAS_OK
    if _ALIAS_OK is None:
        try:
            probe = jnp.arange(8 * 128, dtype=jnp.float32).reshape(8, 128)
            out = _identity_aliased(probe)
            jax.block_until_ready(out)
            _ALIAS_OK = bool(jnp.array_equal(out, probe))
        except Exception:
            _ALIAS_OK = False
    return _ALIAS_OK


def identity(x: jnp.ndarray) -> jnp.ndarray:
    """Forward pass of `nn.Identity`: returns a tensor equal to `x`.

    Zero-copy when the input is donated (jax.jit(identity, donate_argnums=0));
    otherwise XLA inserts the single unavoidable copy.
    """
    if x.ndim == 0 or x.size == 0 or x.size * x.dtype.itemsize <= _TINY_BYTES:
        # Launch + DMA latency dominates for tiny inputs; returning the input
        # is exactly what nn.Identity.forward does.
        return x
    if _zero_copy_supported():
        return _identity_aliased(x)
    return _identity_copied(x)


if __name__ == "__main__":
    key = jax.random.PRNGKey(0)
    # Small NCHW-style input (Identity accepts any shape).
    x = jax.random.normal(key, (2, 4, 16, 16), dtype=jnp.float32)
    x_host = np.asarray(x)   # host copy for checking the donated path

    # 1) Default path (no donation): bit-exact, and x stays valid.
    y = identity(x)
    jax.block_until_ready(y)
    assert y.shape == x.shape, (y.shape, x.shape)
    assert y.dtype == x.dtype, (y.dtype, x.dtype)
    assert bool(jnp.array_equal(y, x)), "Identity output mismatch"

    # 2) Explicit chunked HBM->HBM copy kernel (fallback path): also bit-exact.
    y_copy = _identity_copied(x)
    jax.block_until_ready(y_copy)
    assert bool(jnp.array_equal(y_copy, x)), "Copy-kernel output mismatch"

    # 3) Zero-copy path: donate the input so the output reuses its buffer.
    identity_donated = jax.jit(identity, donate_argnums=0)
    x2 = jnp.asarray(x_host)
    y_donated = identity_donated(x2)       # x2 must not be used afterwards
    jax.block_until_ready(y_donated)
    assert y_donated.shape == tuple(x_host.shape)
    assert y_donated.dtype == x.dtype
    assert bool(np.array_equal(np.asarray(y_donated), x_host)), "Donated-path mismatch"

    print("KERNEL_OK")
</pallas_src>

<mosaic_0001>
module attributes {stable_mosaic.version = 11 : i64} {
  func.func @_identity_alias_kernel(%arg0: memref<8x128xf32, #tpu.memory_space<any>>, %arg1: memref<8x128xf32, #tpu.memory_space<any>>) attributes {dimension_semantics = [], scalar_prefetch = 0 : i64, scratch_operands = 0 : i64, tpu.core_type = #tpu.core_type<tc>} {
    return
  }
}

module attributes {stable_mosaic.version = 11 : i64} {
  func.func @_identity_copy_kernel(%arg0: memref<1x2048xf32, #tpu.memory_space<any>>, %arg1: memref<1x2048xf32, #tpu.memory_space<any>>, %arg2: memref<1x!tpu.dma_semaphore, #tpu.memory_space<semaphore_mem>>) attributes {dimension_semantics = [], scalar_prefetch = 0 : i64, scratch_operands = 1 : i64, tpu.core_type = #tpu.core_type<tc>} {
    %c0_i32 = arith.constant 0 : i32
    %c0_i32_0 = arith.constant 0 : i32
    %c0_i32_1 = arith.constant 0 : i32
    %c0_i32_2 = arith.constant 0 : i32
    %0 = tpu.memref_slice %arg0[%c0_i32, %c0_i32_2] : memref<1x2048xf32, #tpu.memory_space<any>> -> memref<1x2048xf32, #tpu.memory_space<any>>
    %1 = tpu.memref_squeeze %0 : memref<1x2048xf32, #tpu.memory_space<any>> -> memref<2048xf32, #tpu.memory_space<any>>
    %c0_i32_3 = arith.constant 0 : i32
    %2 = tpu.memref_slice %arg1[%c0_i32_0, %c0_i32_3] : memref<1x2048xf32, #tpu.memory_space<any>> -> memref<1x2048xf32, #tpu.memory_space<any>>
    %3 = tpu.memref_squeeze %2 : memref<1x2048xf32, #tpu.memory_space<any>> -> memref<2048xf32, #tpu.memory_space<any>>
    %4 = tpu.memref_slice %arg2[%c0_i32_1] : memref<1x!tpu.dma_semaphore, #tpu.memory_space<semaphore_mem>> -> memref<1x!tpu.dma_semaphore, #tpu.memory_space<semaphore_mem>>
    %5 = tpu.memref_squeeze %4 : memref<1x!tpu.dma_semaphore, #tpu.memory_space<semaphore_mem>> -> memref<!tpu.dma_semaphore, #tpu.memory_space<semaphore_mem>>
    tpu.enqueue_dma source(%1 : memref<2048xf32, #tpu.memory_space<any>>) target(%3 : memref<2048xf32, #tpu.memory_space<any>>) target_semaphore(%5 : memref<!tpu.dma_semaphore, #tpu.memory_space<semaphore_mem>>)
    %c0_i32_4 = arith.constant 0 : i32
    %c0_i32_5 = arith.constant 0 : i32
    %c0_i32_6 = arith.constant 0 : i32
    %c0_i32_7 = arith.constant 0 : i32
    %6 = tpu.memref_slice %arg0[%c0_i32_4, %c0_i32_7] : memref<1x2048xf32, #tpu.memory_space<any>> -> memref<1x2048xf32, #tpu.memory_space<any>>
    %7 = tpu.memref_squeeze %6 : memref<1x2048xf32, #tpu.memory_space<any>> -> memref<2048xf32, #tpu.memory_space<any>>
    %c0_i32_8 = arith.constant 0 : i32
    %8 = tpu.memref_slice %arg1[%c0_i32_5, %c0_i32_8] : memref<1x2048xf32, #tpu.memory_space<any>> -> memref<1x2048xf32, #tpu.memory_space<any>>
    %9 = tpu.memref_squeeze %8 : memref<1x2048xf32, #tpu.memory_space<any>> -> memref<2048xf32, #tpu.memory_space<any>>
    %10 = tpu.memref_slice %arg2[%c0_i32_6] : memref<1x!tpu.dma_semaphore, #tpu.memory_space<semaphore_mem>> -> memref<1x!tpu.dma_semaphore, #tpu.memory_space<semaphore_mem>>
    %11 = tpu.memref_squeeze %10 : memref<1x!tpu.dma_semaphore, #tpu.memory_space<semaphore_mem>> -> memref<!tpu.dma_semaphore, #tpu.memory_space<semaphore_mem>>
    tpu.wait_dma2 semaphore(%11 : memref<!tpu.dma_semaphore, #tpu.memory_space<semaphore_mem>>) src(%7 : memref<2048xf32, #tpu.memory_space<any>>) dst(%9 : memref<2048xf32, #tpu.memory_space<any>>)
    return
  }
}

</mosaic_0001>

<bundles_post_ra>
// kernel: tpu_custom_call.1
= control target key start
LH: loop header
LB: loop body
LE: loop exit
PB: predicated region body
PF: predicated region fallthrough
CT: control target
= control target key end

     0   :  { %s16_s0 = inlined_call_operand.hbm [shape: f32[8,128], index: 0, kind: input, shape index: {}, may-alias: {0,1}]   ;;  %s17_s1 = inlined_call_operand.hbm [shape: f32[8,128], index: 1, kind: output, shape index: {}, may-alias: {0,1}]  }

// kernel: tpu_custom_call.1
= control target key start
LH: loop header
LB: loop body
LE: loop exit
PB: predicated region body
PF: predicated region fallthrough
CT: control target
= control target key end

     0   :  { %s31_s12 = smov [#allocation2]   ;;  %s32_s13 = smov [#allocation3]   ;;  %s50_s0 = inlined_call_operand.hbm [shape: f32[1,2048], index: 0, kind: input, shape index: {}]   ;;  %s51_s1 = inlined_call_operand.hbm [shape: f32[1,2048], index: 1, kind: output, shape index: {}]  }
   0x1   :  { %s10_s8 = sshll.u32 %s50_s0, 4  ;;  %s12_s11 = sshll.u32 %s51_s1, 4  ;;  %s11_s8 = int_to_ptr.hbm [resolvable:$true] %s10_s8  ;;  %s13_s11 = int_to_ptr.hbm [resolvable:$true] %s12_s11 }
   0x2   :  { %s33_s14 = smov 0  }
   0x3   :  { %16 = dma.general %s11_s8, 256, %s13_s11, %s31_s12, %s32_s13, [#allocation4], %s33_s14, 0  }
   0x4   :  { %29 = dma.done.wait [#allocation2], 256 }
   0x5   :  { %30 = vsyncadd [#allocation2], 4294967040 }
   0x6   :  { %19 = vsyncmov [#allocation2] }
   0x9   :  { %s20_s15 = vpop.sfrf %19 }
   0xa   :  { %p25_p0 = scmp.ne.s32.totalorder %s20_s15, 0 }
   0xc   :  { %24 = shalt.err (%p25_p0)  }

</bundles_post_ra>
